<compile_context>
chip_gen: v7x
topology: tpu7x:2x2x1
jax: 0.10.0
libtpu: 0.0.40
codegen_flags: <defaults>
</compile_context>

<pallas_src>
import functools

import jax
import jax.numpy as jnp
from jax import lax
from jax.experimental import pallas as pl
from jax.experimental.pallas import tpu as pltpu


HEADS = 4
DIM_HEAD = 32
DIM = 32
HIDDEN = HEADS * DIM_HEAD          # 128
SCALE = DIM_HEAD ** (-0.5)


def _choose_block_batch(batch, seq, target_rows=512, min_grid_steps=2):
    """Batch elements folded into one grid step.

    Targets large row slabs (>=256 rows fills the 2x256 MXU on v6e/v7x and
    amortizes the ~0.35us per-step overhead) while keeping at least
    `min_grid_steps` grid steps so v7x megacore sharding can split the
    'parallel' axis across its 2 TensorCores.  batch % bt == 0 so blocks
    tile exactly."""
    bt = max(1, min(batch, target_rows // max(seq, 1)))
    if batch >= min_grid_steps:
        bt = min(bt, batch // min_grid_steps)
    bt = max(bt, 1)
    while batch % bt != 0:
        bt -= 1
    return bt


def attention_kernel(x_ref, wqkv_ref, wout_ref, o_ref, qkv_scr, hid_scr, *,
                     block_batch, seq):
    """One grid step = `block_batch` batch elements (rows = block_batch*seq).

    x_ref    : (rows, DIM)        f32  VMEM
    wqkv_ref : (DIM, 3*HIDDEN)    bf16 VMEM (transposed vs torch Linear.weight)
    wout_ref : (HIDDEN, DIM)      bf16 VMEM
    o_ref    : (rows, DIM)        f32  VMEM
    qkv_scr  : (rows, 3*HIDDEN)   f32  VMEM scratch
    hid_scr  : (rows, HIDDEN)     f32  VMEM scratch
    """
    # QKV projection for the whole slab: one (rows,32)x(32,384) MXU matmul,
    # bf16 operands / f32 accumulation.  Result parked in VMEM scratch so
    # q/k/v are loaded per-head on demand (bounds vreg live ranges).
    xb = x_ref[...].astype(jnp.bfloat16)
    qkv_scr[...] = jnp.dot(xb, wqkv_ref[...],
                           preferred_element_type=jnp.float32)

    def per_batch(b, carry):
        row0 = pl.multiple_of(b * seq, 8)            # sublane aligned (seq % 8 == 0)
        rows = pl.ds(row0, seq)
        for h in range(HEADS):                       # short fixed loop: unrolled
            c = h * DIM_HEAD
            qh = qkv_scr[rows, pl.ds(0 * HIDDEN + c, DIM_HEAD)].astype(jnp.bfloat16)
            kh = qkv_scr[rows, pl.ds(1 * HIDDEN + c, DIM_HEAD)].astype(jnp.bfloat16)
            vh = qkv_scr[rows, pl.ds(2 * HIDDEN + c, DIM_HEAD)].astype(jnp.bfloat16)

            # sim = (q @ k^T) * scale  ('... h i d, ... h j d -> ... h i j';
            # scaling after the matmul is identical to scaling q first).
            sim = lax.dot_general(qh, kh, (((1,), (1,)), ((), ())),
                                  preferred_element_type=jnp.float32)   # (N, N)
            sim = sim * SCALE
            # Softmax in f32.
            sim = sim - jnp.max(sim, axis=-1, keepdims=True)
            p = jnp.exp(sim)
            attn = p * pl.reciprocal(jnp.sum(p, axis=-1, keepdims=True),
                                     approx=False)
            head_out = jnp.dot(attn.astype(jnp.bfloat16), vh,
                               preferred_element_type=jnp.float32)      # (N, dh)
            # Store at lane offset h*32: rebuilds '... h n d -> ... n (h d)'
            # with a plain lane-offset store (no relayout).
            hid_scr[rows, pl.ds(c, DIM_HEAD)] = head_out
        return carry

    # Non-unrolled batch loop: a static Python for-loop would not bound live
    # ranges once block_batch grows.
    lax.fori_loop(0, block_batch, per_batch, 0)

    # Fused output projection: ONE (rows,128)@(128,32) matmul for the whole
    # slab and ONE store, instead of 4x K=32 matmuls + adds per batch element.
    o_ref[...] = jnp.dot(hid_scr[...].astype(jnp.bfloat16), wout_ref[...],
                         preferred_element_type=jnp.float32)

    # TODO(synk): if profiling still shows a wall-compute gap from the
    # 32-lane (<128) output tile, present a lane-dense out slab
    # ((rows*DIM)//128, 128) and reshape in the wrapper (matters most on
    # v5e's single vector-store slot).


def attention_pallas(x, w_qkv, w_out):
    """x: (B, N, DIM) f32.  w_qkv: (DIM, 3*HIDDEN) f32.  w_out: (HIDDEN, DIM) f32."""
    B, N, D = x.shape
    assert D == DIM
    assert w_qkv.shape == (DIM, 3 * HIDDEN) and w_out.shape == (HIDDEN, DIM)
    assert N % 8 == 0, "sequence length must be sublane aligned"

    bt = _choose_block_batch(B, N)
    rows_per_block = bt * N
    grid = (B // bt,)

    # (B, N, D) -> (B*N, D): each grid step sees a plain 2-D row slab.
    x2 = x.reshape(B * N, D)
    # bf16 weights: halves weight DMA and feeds the MXU its native dtype.
    wqkv_bf = w_qkv.astype(jnp.bfloat16)
    wout_bf = w_out.astype(jnp.bfloat16)

    flops = (2 * B * N * D * 3 * HIDDEN              # qkv projection
             + 4 * B * HEADS * N * N * DIM_HEAD      # q@k^T and attn@v
             + 2 * B * N * HIDDEN * D)               # output projection
    cost = pl.CostEstimate(
        flops=flops,
        transcendentals=B * HEADS * N * N,           # exp in softmax
        bytes_accessed=(4 * 2 * B * N * D            # x in + out (f32)
                        + 2 * (w_qkv.size + w_out.size)))  # bf16 weights

    # TODO(synk): for very large B with small slabs, add
    # pipeline_mode=pl.Buffered(3) on the x/out BlockSpecs to hide tiny-tile
    # DMA issue latency; at these shapes the 512-row slab target covers it.
    out2 = pl.pallas_call(
        functools.partial(attention_kernel, block_batch=bt, seq=N),
        out_shape=jax.ShapeDtypeStruct((B * N, D), jnp.float32),
        grid_spec=pltpu.PrefetchScalarGridSpec(
            num_scalar_prefetch=0,
            grid=grid,
            in_specs=[
                pl.BlockSpec((rows_per_block, D), lambda i: (i, 0)),
                pl.BlockSpec((D, 3 * HIDDEN), lambda i: (0, 0)),
                pl.BlockSpec((HIDDEN, D), lambda i: (0, 0)),
            ],
            out_specs=pl.BlockSpec((rows_per_block, D), lambda i: (i, 0)),
            scratch_shapes=[
                pltpu.VMEM((rows_per_block, 3 * HIDDEN), jnp.float32),
                pltpu.VMEM((rows_per_block, HIDDEN), jnp.float32),
            ],
        ),
        compiler_params=pltpu.CompilerParams(
            dimension_semantics=("parallel",)),
        cost_estimate=cost,
    )(x2, wqkv_bf, wout_bf)
    return out2.reshape(B, N, D)


def attention_reference(x, w_qkv, w_out):
    """Plain-JAX f32 reference mirroring the PyTorch forward (simplest path)."""
    B, N, D = x.shape
    qkv = x @ w_qkv
    q, k, v = jnp.split(qkv, 3, axis=-1)

    def split_heads(t):  # '... n (h d) -> ... h n d'
        return t.reshape(B, N, HEADS, DIM_HEAD).transpose(0, 2, 1, 3)

    q, k, v = split_heads(q) * SCALE, split_heads(k), split_heads(v)
    sim = jnp.einsum('bhid,bhjd->bhij', q, k)
    sim = sim - jnp.max(sim, axis=-1, keepdims=True)
    attn = jax.nn.softmax(sim, axis=-1)
    out = jnp.einsum('bhij,bhjd->bhid', attn, v)
    out = out.transpose(0, 2, 1, 3).reshape(B, N, HIDDEN)
    return out @ w_out


if __name__ == "__main__":
    key = jax.random.PRNGKey(0)
    kx, kq, ko = jax.random.split(key, 3)

    B, N = 2, 16
    x = jax.random.normal(kx, (B, N, DIM), dtype=jnp.float32)

    # torch Linear stores weight as (out, in); we pass the transposed
    # (in, out) matrices that the kernel multiplies with.
    w_qkv = (jax.random.normal(kq, (DIM, 3 * HIDDEN), dtype=jnp.float32)
             * (1.0 / jnp.sqrt(DIM)))
    w_out = (jax.random.normal(ko, (HIDDEN, DIM), dtype=jnp.float32)
             * (1.0 / jnp.sqrt(HIDDEN)))

    out = attention_pallas(x, w_qkv, w_out)
    out = jax.block_until_ready(out)

    ref = attention_reference(x, w_qkv, w_out)
    assert out.shape == (B, N, DIM)
    # bf16 MXU operands (f32 accumulation) -> tolerance relaxed vs the pure
    # f32 version; wrong math would differ by O(1).
    assert jnp.allclose(out, ref, atol=5e-2, rtol=5e-2), "mismatch vs reference"

    # TODO(synk): rotary_emb / pos_bias / focus_present_mask branches not
    # exercised (module defaults & None args take the plain-attention path).
    print("KERNEL_OK")
</pallas_src>

<mosaic_0001>
module attributes {stable_mosaic.version = 11 : i64} {
  func.func @attention_kernel(%arg0: i32, %arg1: memref<16x32xf32, #tpu.memory_space<vmem>>, %arg2: memref<32x384xbf16, #tpu.memory_space<vmem>>, %arg3: memref<128x32xbf16, #tpu.memory_space<vmem>>, %arg4: memref<16x32xf32, #tpu.memory_space<vmem>>, %arg5: memref<16x384xf32, #tpu.memory_space<vmem>>, %arg6: memref<16x128xf32, #tpu.memory_space<vmem>>) attributes {dimension_semantics = [#tpu.dimension_semantics<parallel>], iteration_bounds = array<i64: 2>, scalar_prefetch = 0 : i64, scratch_operands = 2 : i64, tpu.core_type = #tpu.core_type<tc>, window_params = [{transform_indices = @transform_0, window_bounds = array<i64: 16, 32>}, {pipeline_mode = #tpu.pipeline_mode<synchronous>, transform_indices = @transform_1, window_bounds = array<i64: 32, 384>}, {pipeline_mode = #tpu.pipeline_mode<synchronous>, transform_indices = @transform_2, window_bounds = array<i64: 128, 32>}, {transform_indices = @transform_3, window_bounds = array<i64: 16, 32>}]} {
    %c0 = arith.constant 0 : index
    %c0_0 = arith.constant 0 : index
    %0 = vector.load %arg1[%c0, %c0_0] : memref<16x32xf32, #tpu.memory_space<vmem>>, vector<16x32xf32>
    %1 = arith.truncf %0 : vector<16x32xf32> to vector<16x32xbf16>
    %c0_1 = arith.constant 0 : index
    %c0_2 = arith.constant 0 : index
    %2 = vector.load %arg2[%c0_1, %c0_2] : memref<32x384xbf16, #tpu.memory_space<vmem>>, vector<32x384xbf16>
    %cst = arith.constant dense<0.000000e+00> : vector<16x384xf32>
    %3 = tpu.matmul %1, %2, %cst {dimension_numbers = #tpu.dot_dimension_numbers<[1], [0], [0], [1], [0, 0, 1, 1], [], []>} : vector<16x32xbf16>, vector<32x384xbf16>, vector<16x384xf32> -> vector<16x384xf32>
    %c0_3 = arith.constant 0 : index
    %c0_4 = arith.constant 0 : index
    %4 = vector.load %arg5[%c0_3, %c0_4] : memref<16x384xf32, #tpu.memory_space<vmem>>, vector<16x384xf32>
    tpu.vector_store %arg5[%c0_3, %c0_4], %3 {strides = array<i32>} : memref<16x384xf32, #tpu.memory_space<vmem>>, vector<16x384xf32>,
    %c0_i32 = arith.constant 0 : i32
    %c16_i32 = arith.constant 16 : i32
    %5 = arith.muli %c0_i32, %c16_i32 : i32
    %6 = tpu.assume_multiple %5, 8 : i32
    %7 = arith.index_cast %6 : i32 to index
    %c0_5 = arith.constant 0 : index
    %8 = vector.load %arg5[%7, %c0_5] : memref<16x384xf32, #tpu.memory_space<vmem>>, vector<16x32xf32>
    %9 = arith.truncf %8 : vector<16x32xf32> to vector<16x32xbf16>
    %10 = arith.index_cast %6 : i32 to index
    %c128 = arith.constant 128 : index
    %11 = vector.load %arg5[%10, %c128] : memref<16x384xf32, #tpu.memory_space<vmem>>, vector<16x32xf32>
    %12 = arith.truncf %11 : vector<16x32xf32> to vector<16x32xbf16>
    %13 = arith.index_cast %6 : i32 to index
    %c256 = arith.constant 256 : index
    %14 = vector.load %arg5[%13, %c256] : memref<16x384xf32, #tpu.memory_space<vmem>>, vector<16x32xf32>
    %15 = arith.truncf %14 : vector<16x32xf32> to vector<16x32xbf16>
    %cst_6 = arith.constant dense<0.000000e+00> : vector<16x16xf32>
    %16 = tpu.matmul %9, %12, %cst_6 {dimension_numbers = #tpu.dot_dimension_numbers<[1], [1], [0], [0], [0, 0, 1, 0], [], []>} : vector<16x32xbf16>, vector<16x32xbf16>, vector<16x16xf32> -> vector<16x16xf32>
    %cst_7 = arith.constant 0.176776692 : f32
    %17 = vector.broadcast %cst_7 : f32 to vector<16x16xf32>
    %18 = arith.mulf %16, %17 : vector<16x16xf32>
    %cst_8 = arith.constant dense<0xFF800000> : vector<16xf32>
    %19 = vector.multi_reduction <maximumf>, %18, %cst_8 [1] : vector<16x16xf32> to vector<16xf32>
    %20 = vector.shape_cast %19 : vector<16xf32> to vector<16x1xf32>
    %21 = vector.broadcast %20 : vector<16x1xf32> to vector<16x16xf32>
    %22 = arith.subf %18, %21 : vector<16x16xf32>
    %23 = math.exp %22 : vector<16x16xf32>
    %cst_9 = arith.constant dense<0.000000e+00> : vector<16xf32>
    %24 = vector.multi_reduction <add>, %23, %cst_9 [1] : vector<16x16xf32> to vector<16xf32>
    %25 = vector.shape_cast %24 : vector<16xf32> to vector<16x1xf32>
    %26 = tpu.reciprocal %25 : vector<16x1xf32> -> vector<16x1xf32>
    %27 = vector.broadcast %26 : vector<16x1xf32> to vector<16x16xf32>
    %28 = arith.mulf %23, %27 : vector<16x16xf32>
    %29 = arith.truncf %28 : vector<16x16xf32> to vector<16x16xbf16>
    %cst_10 = arith.constant dense<0.000000e+00> : vector<16x32xf32>
    %30 = tpu.matmul %29, %15, %cst_10 {dimension_numbers = #tpu.dot_dimension_numbers<[1], [0], [0], [1], [0, 0, 1, 1], [], []>} : vector<16x16xbf16>, vector<16x32xbf16>, vector<16x32xf32> -> vector<16x32xf32>
    %31 = arith.index_cast %6 : i32 to index
    %c0_11 = arith.constant 0 : index
    %32 = vector.load %arg6[%31, %c0_11] : memref<16x128xf32, #tpu.memory_space<vmem>>, vector<16x32xf32>
    tpu.vector_store %arg6[%31, %c0_11], %30 {strides = array<i32>} : memref<16x128xf32, #tpu.memory_space<vmem>>, vector<16x32xf32>,
    %33 = arith.index_cast %6 : i32 to index
    %c32 = arith.constant 32 : index
    %34 = vector.load %arg5[%33, %c32] : memref<16x384xf32, #tpu.memory_space<vmem>>, vector<16x32xf32>
    %35 = arith.truncf %34 : vector<16x32xf32> to vector<16x32xbf16>
    %36 = arith.index_cast %6 : i32 to index
    %c160 = arith.constant 160 : index
    %37 = vector.load %arg5[%36, %c160] : memref<16x384xf32, #tpu.memory_space<vmem>>, vector<16x32xf32>
    %38 = arith.truncf %37 : vector<16x32xf32> to vector<16x32xbf16>
    %39 = arith.index_cast %6 : i32 to index
    %c288 = arith.constant 288 : index
    %40 = vector.load %arg5[%39, %c288] : memref<16x384xf32, #tpu.memory_space<vmem>>, vector<16x32xf32>
    %41 = arith.truncf %40 : vector<16x32xf32> to vector<16x32xbf16>
    %cst_12 = arith.constant dense<0.000000e+00> : vector<16x16xf32>
    %42 = tpu.matmul %35, %38, %cst_12 {dimension_numbers = #tpu.dot_dimension_numbers<[1], [1], [0], [0], [0, 0, 1, 0], [], []>} : vector<16x32xbf16>, vector<16x32xbf16>, vector<16x16xf32> -> vector<16x16xf32>
    %cst_13 = arith.constant 0.176776692 : f32
    %43 = vector.broadcast %cst_13 : f32 to vector<16x16xf32>
    %44 = arith.mulf %42, %43 : vector<16x16xf32>
    %cst_14 = arith.constant dense<0xFF800000> : vector<16xf32>
    %45 = vector.multi_reduction <maximumf>, %44, %cst_14 [1] : vector<16x16xf32> to vector<16xf32>
    %46 = vector.shape_cast %45 : vector<16xf32> to vector<16x1xf32>
    %47 = vector.broadcast %46 : vector<16x1xf32> to vector<16x16xf32>
    %48 = arith.subf %44, %47 : vector<16x16xf32>
    %49 = math.exp %48 : vector<16x16xf32>
    %cst_15 = arith.constant dense<0.000000e+00> : vector<16xf32>
    %50 = vector.multi_reduction <add>, %49, %cst_15 [1] : vector<16x16xf32> to vector<16xf32>
    %51 = vector.shape_cast %50 : vector<16xf32> to vector<16x1xf32>
    %52 = tpu.reciprocal %51 : vector<16x1xf32> -> vector<16x1xf32>
    %53 = vector.broadcast %52 : vector<16x1xf32> to vector<16x16xf32>
    %54 = arith.mulf %49, %53 : vector<16x16xf32>
    %55 = arith.truncf %54 : vector<16x16xf32> to vector<16x16xbf16>
    %cst_16 = arith.constant dense<0.000000e+00> : vector<16x32xf32>
    %56 = tpu.matmul %55, %41, %cst_16 {dimension_numbers = #tpu.dot_dimension_numbers<[1], [0], [0], [1], [0, 0, 1, 1], [], []>} : vector<16x16xbf16>, vector<16x32xbf16>, vector<16x32xf32> -> vector<16x32xf32>
    %57 = arith.index_cast %6 : i32 to index
    %c32_17 = arith.constant 32 : index
    %58 = vector.load %arg6[%57, %c32_17] : memref<16x128xf32, #tpu.memory_space<vmem>>, vector<16x32xf32>
    tpu.vector_store %arg6[%57, %c32_17], %56 {strides = array<i32>} : memref<16x128xf32, #tpu.memory_space<vmem>>, vector<16x32xf32>,
    %59 = arith.index_cast %6 : i32 to index
    %c64 = arith.constant 64 : index
    %60 = vector.load %arg5[%59, %c64] : memref<16x384xf32, #tpu.memory_space<vmem>>, vector<16x32xf32>
    %61 = arith.truncf %60 : vector<16x32xf32> to vector<16x32xbf16>
    %62 = arith.index_cast %6 : i32 to index
    %c192 = arith.constant 192 : index
    %63 = vector.load %arg5[%62, %c192] : memref<16x384xf32, #tpu.memory_space<vmem>>, vector<16x32xf32>
    %64 = arith.truncf %63 : vector<16x32xf32> to vector<16x32xbf16>
    %65 = arith.index_cast %6 : i32 to index
    %c320 = arith.constant 320 : index
    %66 = vector.load %arg5[%65, %c320] : memref<16x384xf32, #tpu.memory_space<vmem>>, vector<16x32xf32>
    %67 = arith.truncf %66 : vector<16x32xf32> to vector<16x32xbf16>
    %cst_18 = arith.constant dense<0.000000e+00> : vector<16x16xf32>
    %68 = tpu.matmul %61, %64, %cst_18 {dimension_numbers = #tpu.dot_dimension_numbers<[1], [1], [0], [0], [0, 0, 1, 0], [], []>} : vector<16x32xbf16>, vector<16x32xbf16>, vector<16x16xf32> -> vector<16x16xf32>
    %cst_19 = arith.constant 0.176776692 : f32
    %69 = vector.broadcast %cst_19 : f32 to vector<16x16xf32>
    %70 = arith.mulf %68, %69 : vector<16x16xf32>
    %cst_20 = arith.constant dense<0xFF800000> : vector<16xf32>
    %71 = vector.multi_reduction <maximumf>, %70, %cst_20 [1] : vector<16x16xf32> to vector<16xf32>
    %72 = vector.shape_cast %71 : vector<16xf32> to vector<16x1xf32>
    %73 = vector.broadcast %72 : vector<16x1xf32> to vector<16x16xf32>
    %74 = arith.subf %70, %73 : vector<16x16xf32>
    %75 = math.exp %74 : vector<16x16xf32>
    %cst_21 = arith.constant dense<0.000000e+00> : vector<16xf32>
    %76 = vector.multi_reduction <add>, %75, %cst_21 [1] : vector<16x16xf32> to vector<16xf32>
    %77 = vector.shape_cast %76 : vector<16xf32> to vector<16x1xf32>
    %78 = tpu.reciprocal %77 : vector<16x1xf32> -> vector<16x1xf32>
    %79 = vector.broadcast %78 : vector<16x1xf32> to vector<16x16xf32>
    %80 = arith.mulf %75, %79 : vector<16x16xf32>
    %81 = arith.truncf %80 : vector<16x16xf32> to vector<16x16xbf16>
    %cst_22 = arith.constant dense<0.000000e+00> : vector<16x32xf32>
    %82 = tpu.matmul %81, %67, %cst_22 {dimension_numbers = #tpu.dot_dimension_numbers<[1], [0], [0], [1], [0, 0, 1, 1], [], []>} : vector<16x16xbf16>, vector<16x32xbf16>, vector<16x32xf32> -> vector<16x32xf32>
    %83 = arith.index_cast %6 : i32 to index
    %c64_23 = arith.constant 64 : index
    %84 = vector.load %arg6[%83, %c64_23] : memref<16x128xf32, #tpu.memory_space<vmem>>, vector<16x32xf32>
    tpu.vector_store %arg6[%83, %c64_23], %82 {strides = array<i32>} : memref<16x128xf32, #tpu.memory_space<vmem>>, vector<16x32xf32>,
    %85 = arith.index_cast %6 : i32 to index
    %c96 = arith.constant 96 : index
    %86 = vector.load %arg5[%85, %c96] : memref<16x384xf32, #tpu.memory_space<vmem>>, vector<16x32xf32>
    %87 = arith.truncf %86 : vector<16x32xf32> to vector<16x32xbf16>
    %88 = arith.index_cast %6 : i32 to index
    %c224 = arith.constant 224 : index
    %89 = vector.load %arg5[%88, %c224] : memref<16x384xf32, #tpu.memory_space<vmem>>, vector<16x32xf32>
    %90 = arith.truncf %89 : vector<16x32xf32> to vector<16x32xbf16>
    %91 = arith.index_cast %6 : i32 to index
    %c352 = arith.constant 352 : index
    %92 = vector.load %arg5[%91, %c352] : memref<16x384xf32, #tpu.memory_space<vmem>>, vector<16x32xf32>
    %93 = arith.truncf %92 : vector<16x32xf32> to vector<16x32xbf16>
    %cst_24 = arith.constant dense<0.000000e+00> : vector<16x16xf32>
    %94 = tpu.matmul %87, %90, %cst_24 {dimension_numbers = #tpu.dot_dimension_numbers<[1], [1], [0], [0], [0, 0, 1, 0], [], []>} : vector<16x32xbf16>, vector<16x32xbf16>, vector<16x16xf32> -> vector<16x16xf32>
    %cst_25 = arith.constant 0.176776692 : f32
    %95 = vector.broadcast %cst_25 : f32 to vector<16x16xf32>
    %96 = arith.mulf %94, %95 : vector<16x16xf32>
    %cst_26 = arith.constant dense<0xFF800000> : vector<16xf32>
    %97 = vector.multi_reduction <maximumf>, %96, %cst_26 [1] : vector<16x16xf32> to vector<16xf32>
    %98 = vector.shape_cast %97 : vector<16xf32> to vector<16x1xf32>
    %99 = vector.broadcast %98 : vector<16x1xf32> to vector<16x16xf32>
    %100 = arith.subf %96, %99 : vector<16x16xf32>
    %101 = math.exp %100 : vector<16x16xf32>
    %cst_27 = arith.constant dense<0.000000e+00> : vector<16xf32>
    %102 = vector.multi_reduction <add>, %101, %cst_27 [1] : vector<16x16xf32> to vector<16xf32>
    %103 = vector.shape_cast %102 : vector<16xf32> to vector<16x1xf32>
    %104 = tpu.reciprocal %103 : vector<16x1xf32> -> vector<16x1xf32>
    %105 = vector.broadcast %104 : vector<16x1xf32> to vector<16x16xf32>
    %106 = arith.mulf %101, %105 : vector<16x16xf32>
    %107 = arith.truncf %106 : vector<16x16xf32> to vector<16x16xbf16>
    %cst_28 = arith.constant dense<0.000000e+00> : vector<16x32xf32>
    %108 = tpu.matmul %107, %93, %cst_28 {dimension_numbers = #tpu.dot_dimension_numbers<[1], [0], [0], [1], [0, 0, 1, 1], [], []>} : vector<16x16xbf16>, vector<16x32xbf16>, vector<16x32xf32> -> vector<16x32xf32>
    %109 = arith.index_cast %6 : i32 to index
    %c96_29 = arith.constant 96 : index
    %110 = vector.load %arg6[%109, %c96_29] : memref<16x128xf32, #tpu.memory_space<vmem>>, vector<16x32xf32>
    tpu.vector_store %arg6[%109, %c96_29], %108 {strides = array<i32>} : memref<16x128xf32, #tpu.memory_space<vmem>>, vector<16x32xf32>,
    %c1_i32 = arith.constant 1 : i32
    %c0_30 = arith.constant 0 : index
    %c0_31 = arith.constant 0 : index
    %111 = vector.load %arg6[%c0_30, %c0_31] : memref<16x128xf32, #tpu.memory_space<vmem>>, vector<16x128xf32>
    %112 = arith.truncf %111 : vector<16x128xf32> to vector<16x128xbf16>
    %c0_32 = arith.constant 0 : index
    %c0_33 = arith.constant 0 : index
    %113 = vector.load %arg3[%c0_32, %c0_33] : memref<128x32xbf16, #tpu.memory_space<vmem>>, vector<128x32xbf16>
    %cst_34 = arith.constant dense<0.000000e+00> : vector<16x32xf32>
    %114 = tpu.matmul %112, %113, %cst_34 {dimension_numbers = #tpu.dot_dimension_numbers<[1], [0], [0], [1], [0, 0, 1, 1], [], []>} : vector<16x128xbf16>, vector<128x32xbf16>, vector<16x32xf32> -> vector<16x32xf32>
    %c0_35 = arith.constant 0 : index
    %c0_36 = arith.constant 0 : index
    %115 = vector.load %arg4[%c0_35, %c0_36] : memref<16x32xf32, #tpu.memory_space<vmem>>, vector<16x32xf32>
    tpu.vector_store %arg4[%c0_35, %c0_36], %114 {strides = array<i32>} : memref<16x32xf32, #tpu.memory_space<vmem>>, vector<16x32xf32>,
    return
  }
  func.func @transform_0(%arg0: i32) -> (i32, i32) {
    %c0_i32 = arith.constant 0 : i32
    %c0_i32_0 = arith.constant 0 : i32
    return %arg0, %c0_i32 : i32, i32
  }
  func.func @transform_1(%arg0: i32) -> (i32, i32) {
    %c0_i32 = arith.constant 0 : i32
    %c0_i32_0 = arith.constant 0 : i32
    %c0_i32_1 = arith.constant 0 : i32
    return %c0_i32, %c0_i32_0 : i32, i32
  }
  func.func @transform_2(%arg0: i32) -> (i32, i32) {
    %c0_i32 = arith.constant 0 : i32
    %c0_i32_0 = arith.constant 0 : i32
    %c0_i32_1 = arith.constant 0 : i32
    return %c0_i32, %c0_i32_0 : i32, i32
  }
  func.func @transform_3(%arg0: i32) -> (i32, i32) {
    %c0_i32 = arith.constant 0 : i32
    %c0_i32_0 = arith.constant 0 : i32
    return %arg0, %c0_i32 : i32, i32
  }
}

</mosaic_0001>

<bundles_post_ra>
// kernel: tpu_custom_call.1
= control target key start
LH: loop header
LB: loop body
LE: loop exit
PB: predicated region body
PF: predicated region fallthrough
CT: control target
= control target key end

     0   :  { %8 = vsyncpa [#allocation5], 0  ;;  %s1631_s0 = inlined_call_operand.vmem [shape: f32[32,32], index: 0, kind: input, shape index: {}]   ;;  %s1632_s1 = inlined_call_operand.vmem [shape: bf16[32,384], index: 1, kind: input, shape index: {}]   ;;  %s1633_s2 = inlined_call_operand.vmem [shape: bf16[128,32], index: 2, kind: input, shape index: {}]   ;;  %s1634_s3 = inlined_call_operand.hbm [shape: f32[32,32], index: 3, kind: output, shape index: {}]  }
   0x1   :  { %10 = vsyncpa [#allocation5 + $0x1], 0  ;;  %s1394_s12 = smov 0   ;;  %s1396_s13 = smov 0  }
   0x2   :  { %s1398_s14 = smov 0   ;;  %s1400_s15 = smov 0  }
   0x3 LB: > { %s1415_s16 = sadd.s32 4294967295, %s1363_s15   ;;  %s1065_s17 = sadd.s32 4294967294, %s1363_s15   ;;  %s1363_s15 = sphi %s1400_s15, %s1640_s15   ;;  %s1359_s14 = sphi %s1398_s14, %s1639_s14   ;;  %s1355_s13 = sphi %s1396_s13, %s1638_s13   ;;  %s1351_s12 = sphi %s1394_s12, %s1637_s12  }
   0x4   : > { %s1419_s18 = sadd.s32 1, %s1363_s15   ;;  %s91_s19 = sadd.s32 1, %s1359_s14 }
   0x5   : > { %s88_s20 = ssub.s32 %s1363_s15, %s1419_s18  ;;  %p101_p0 = scmp.ne.s32.totalorder %s1359_s14, %s1355_s13 }
   0x6   : > { %p89_p1 = scmp.eq.s32.totalorder %s88_s20, 0  ;;  %p102_p2 = scmp.eq.s32.totalorder %s1415_s16, 1 }
   0x7   : > { %p107_p3 = scmp.ne.s32.totalorder %s1355_s13, %s1351_s12  ;;  %p108_p4 = scmp.eq.s32.totalorder %s1065_s17, 1 }
   0x8   : > { %s1430_s21 = scalar_select %p89_p1, %s1359_s14, %s91_s19  }
   0x9   : > { %p1432_p5 = por %p102_p2, %p101_p0  ;;  %p1436_p6 = por %p108_p4, %p107_p3 }
   0xa   : > { %p1068_p7 = scmp.ge.s32.totalorder %s1363_s15, 1  ;;  %p141_p8 = scmp.lt.s32.totalorder %s1363_s15, 3 }
   0xc   : > { %p142_p9 = pnand %p1068_p7, %p141_p8 }
   0xd   : > { %v1253_v0 = vld [vmem:[%s1632_s1 + $0x4] ss:$12 sps:$4 sm:$0xff] (!%p142_p9)   ;;  %s1070_s26 = sshll.u32 (!%p142_p9), %s1415_s16, 1  ;;  %v1255_v1 = vld [vmem:[%s1632_s1] ss:$12 sps:$4 sm:$0xff] (!%p142_p9)   ;;  %v1365_v2 = vmov (!%p142_p9), 0  }
   0xe   : > { %145 = sbr.rel (%p142_p9) target bundleno = 1485 (0x5cd), region = 32  ;;  %252 = vmatprep.mubr.bf16.mxu1 (!%p142_p9), %v1365_v2  ;;  %p166_p10 = scmp.lt.s32.totalorder (!%p142_p9), %s1070_s26, 3  ;;  %220 = vmatprep.subr.bf16.mxu1 (!%p142_p9), %v1253_v0  ;;  %v1256_v3 = vld [vmem:[%s1632_s1 + $0x1c] ss:$12 sps:$4 sm:$0xff] (!%p142_p9)   ;;  %v1258_v4 = vld [vmem:[%s1632_s1 + $0x18] ss:$12 sps:$4 sm:$0xff] (!%p142_p9)  }
   0xf   : > { %221 = vmatpush1.bf16.msra.mxu1 (!%p142_p9), %v1255_v1  ;;  %v1366_v5 = vmov (!%p142_p9), 0.0   ;;  %v1259_v6 = vld [vmem:[%s1632_s1 + $0x8] ss:$12 sps:$4 sm:$0xff] (!%p142_p9)   ;;  %vm216_vm0 = vcmask (!%p142_p9), 261120   ;;  %v1260_v10 = vld [vmem:[%s1632_s1 + $0x20] ss:$12 sps:$4 sm:$0xff] (!%p142_p9)  }
  0x10   : > { %1150 = vmatprep.subr.bf16.mxu0 (!%p142_p9), %v1366_v5  ;;  %222 = vmatprep.subr.bf16.mxu1 (!%p142_p9), %v1256_v3  ;;  %vm1367_vm1 = vmmov (!%p142_p9), 0   ;;  %s1368_s20 = smov (!%p142_p9), 64   ;;  %s1369_s24 = smov (!%p142_p9), 96   ;;  %vm371_vm2 = vcmask (!%p142_p9), 130048   ;;  %vm584_vm3 = vcmask (!%p142_p9), 523520   ;;  %vm730_vm4 = vcmask (!%p142_p9), 785920  }
  0x11   : > { %1152 = vmatprep.mubr.msk.bf16.mxu0 (!%p142_p9), %vm1367_vm1, %v1366_v5  ;;  %s1370_s25 = smov (!%p142_p9), 32   ;;  %vm876_vm5 = vcmask (!%p142_p9), 1048320   ;;  %s1101_s28 = sshll.u32 (!%p142_p9), %s1415_s16, 8 }
  0x12   : > { %s1587_s4 = scalar_lea.hbm (!%p142_p9), %s1634_s3, %s1101_s28 }
  0x13   : > { %223 = vmatpush1.bf16.msra.mxu1 (!%p142_p9), %v1258_v4 }
  0x14   : > { %1130 = vmatprep.subr.bf16.mxu1 (!%p142_p9), %v1366_v5 }
  0x15   : > { %s1642_s26 = smov (!%p166_p10, %s1070_s26), 3 }
  0x16   : > { %s1071_s6 = sshll.u32 %s1642_s26, 3 }
  0x17   : > { %s169_s11 = scalar_lea.vmem %s1631_s0, %s1071_s6  ;;  %s1371_s6 = smov [#allocation4]  }
  0x18   : > { %v173_v7 = vld [vmem:[%s169_s11] sm:$0xff]  ;;  %v174_v8 = vld [vmem:[%s169_s11 + $0x8] sm:$0xff]  ;;  %s1305_s7 = sshll.u32 %s1371_s6, 4  ;;  %s1306_s7 = int_to_ptr.vmem [resolvable:$false] %s1305_s7 }
  0x19   : > { %v175_v9 = vpack.c.bf16 %v174_v8, %v173_v7  ;;  %s1307_s8 = scalar_lea.vmem %s1306_s7, 512 }
  0x1b   : > { %1078 = vmatmul.mubr.msk.bf16.vlgmr.msra.gmra.mrb[0].mxu1 %vm216_vm0, %v175_v9 }
  0x1c   : > { %1131 = vmatpush3.bf16.msra.mxu1 %v1259_v6  ;;  %1134 = vmatprep.mubr.msk.bf16.mxu1 %vm1367_vm1, %v1366_v5 }
  0x1d   : > { %1132 = vmatprep.subr.bf16.mxu1 %v1366_v5 }
  0x20   : > { %1133 = vmatpush3.bf16.msra.mxu1 %v1260_v10 }
  0x21   : > { %1138 = vmatprep.subr.bf16.mxu1 %v1366_v5 }
  0x23   : > { %1135 = vmatmul.mubr.msk.bf16.vlgmr.msra.gmra.mrb[4].mxu1 %vm216_vm0, %v175_v9 }
  0x24   : > { %1140 = vmatprep.mubr.msk.bf16.mxu1 %vm1367_vm1, %v1366_v5 }
  0xee   : > { %v254_v11 = vpop.f32.mrb[0].mxu1 }
  0xef   : > { %v256_v12 = vpop.f32.mrb[1].mxu1 }
  0xf0   : > { %v258_v13 = vpop.f32.mrb[2].mxu1 }
  0xf1   : > { %v315_v14 = vpack.c.bf16 %v258_v13, %v254_v11  ;;  %v260_v15 = vpop.f32.mrb[3].mxu1 }
  0xf2   : > { %v318_v16 = vpack.c.bf16 %v260_v15, %v256_v12 }
  0xf4   : > { %600 = vrot.lane.b32.xlu1 %v318_v16, %s1368_s20  ;;  %454 = vrot.lane.b32.xlu0 %v318_v16, %s1369_s24  ;;  %v326_v17 = vsel %vm216_vm0, %v318_v16, 0 }
  0xf5   : > { %1139 = vmatpush3.bf16.xpose.msra.mxu1 %v326_v17 }
  0xf6   : > { %1144 = vmatprep.subr.bf16.mxu1 %v1366_v5  ;;  %v297_v18 = vpop.f32.mrb[4].mxu1 }
  0xf7   : > { %v1136_v19 = vpop.f32.mrb[5].mxu1 }
  0xf8   : > { %597 = vrot.lane.b32.xlu1 %v315_v14, %s1368_s20  ;;  %451 = vrot.lane.b32.xlu0 %v315_v14, %s1369_s24  ;;  %v300_v20 = vpop.f32.mrb[6].mxu1 }
  0xf9   : > { %v1487_v21 = vpack.c.bf16 %v300_v20, %v297_v18  ;;  %v1137_v22 = vpop.f32.mrb[7].mxu1 }
  0xfc   : > { %743 = vrot.lane.b32.xlu1 %v315_v14, %s1370_s25  ;;  %746 = vrot.lane.b32.xlu0 %v318_v16, %s1370_s25 }
  0xfd   : > { %1141 = vmatmul.mubr.msk.bf16.vlgmr.msra.gmra.mrb[8].mxu1 %vm216_vm0, %v315_v14 }
  0xfe   : > { %1146 = vmatprep.mubr.msk.bf16.mxu1 %vm1367_vm1, %v1366_v5  ;;  %1145 = vmatpush3.bf16.msra.mxu1 %v1487_v21 }
  0xff   : > { %1156 = vmatprep.subr.bf16.mxu1 %v1366_v5 }
 0x166   : > { %v455_v23 = vpop.permute.xlu0 %454  ;;  %v601_v25 = vpop.permute.xlu1 %600 }
 0x167   : > { %v460_v24 = vsel %vm216_vm0, %v455_v23, 0  ;;  %v606_v27 = vsel %vm216_vm0, %v601_v25, 0 }
 0x168   : > { %1151 = vmatpush3.bf16.xpose.msra.mxu0 %v460_v24 }
 0x169   : > { %1162 = vmatprep.subr.bf16.mxu0 %v1366_v5 }
 0x16a   : > { %v452_v26 = vpop.permute.xlu0 %451  ;;  %v598_v29 = vpop.permute.xlu1 %597 }
 0x16e   : > { %v747_v28 = vpop.permute.xlu0 %746  ;;  %v744_v31 = vpop.permute.xlu1 %743 }
 0x16f   : > { %1153 = vmatmul.mubr.msk.bf16.vlgmr.msra.gmra.mrb[0].mxu0 %vm216_vm0, %v452_v26  ;;  %v752_v30 = vsel %vm216_vm0, %v747_v28, 0 }
 0x170   : > { %1163 = vmatpush3.bf16.xpose.msra.mxu0 %v606_v27  ;;  %1164 = vmatprep.mubr.msk.bf16.mxu0 %vm1367_vm1, %v1366_v5 }
 0x171   : > { %1174 = vmatprep.subr.bf16.mxu0 %v1366_v5 }
 0x177   : > { %1165 = vmatmul.mubr.msk.bf16.vlgmr.msra.gmra.mrb[4].mxu0 %vm216_vm0, %v598_v29 }
 0x178   : > { %1175 = vmatpush3.bf16.xpose.msra.mxu0 %v752_v30  ;;  %1176 = vmatprep.mubr.msk.bf16.mxu0 %vm1367_vm1, %v1366_v5 }
 0x179   : > { %1186 = vmatprep.subr.bf16.mxu0 %v1366_v5 }
 0x17f   : > { %1177 = vmatmul.mubr.msk.bf16.vlgmr.msra.gmra.mrb[8].mxu0 %vm216_vm0, %v744_v31 }
 0x180   : > { %1202 = vmatprep.mubr.msk.bf16.mxu0 %vm1367_vm1, %v1366_v5 }
 0x1d0   : > { %v362_v32 = vpop.f32.mrb[8].mxu1 }
 0x1d1   : > { %v369_v33 = vmul.f32 0.17677669, %v362_v32  ;;  %v1142_v34 = vpop.f32.mrb[9].mxu1 }
 0x1d2   : > { %v365_v35 = vpop.f32.mrb[10].mxu1 }
 0x1d3   : > { %v370_v36 = vmul.f32 0.17677669, %v365_v35  ;;  %v1143_v37 = vpop.f32.mrb[11].mxu1  ;;  %v372_v38 = vsel %vm371_vm2, %v369_v33, -inf }
 0x1d4   : > { %373 = vmax.xlane.f32.xlu0 %v372_v38 }
 0x1d5   : > { %v375_v39 = vsel %vm371_vm2, %v370_v36, -inf }
 0x1d6   : > { %376 = vmax.xlane.f32.xlu1 %v375_v39 }
 0x242   : > { %v496_v40 = vpop.f32.mrb[0].mxu0 }
 0x243   : > { %v503_v41 = vmul.f32 0.17677669, %v496_v40  ;;  %v1154_v42 = vpop.f32.mrb[1].mxu0 }
 0x244   : > { %v499_v43 = vpop.f32.mrb[2].mxu0 }
 0x245   : > { %v504_v44 = vmul.f32 0.17677669, %v499_v43  ;;  %v1155_v45 = vpop.f32.mrb[3].mxu0  ;;  %v505_v46 = vsel %vm371_vm2, %v503_v41, -inf }
 0x246   : > { %506 = vmax.xlane.f32.xlu0 %v505_v46 }
 0x247   : > { %v508_v47 = vsel %vm371_vm2, %v504_v44, -inf }
 0x24a   : > { %v642_v48 = vpop.f32.mrb[4].mxu0  ;;  %509 = vmax.xlane.f32.xlu0 %v508_v47 }
 0x24b   : > { %v649_v49 = vmul.f32 0.17677669, %v642_v48  ;;  %v1166_v50 = vpop.f32.mrb[5].mxu0 }
 0x24c   : > { %v645_v51 = vpop.f32.mrb[6].mxu0 }
 0x24d   : > { %v650_v52 = vmul.f32 0.17677669, %v645_v51  ;;  %v1167_v53 = vpop.f32.mrb[7].mxu0  ;;  %v651_v54 = vsel %vm371_vm2, %v649_v49, -inf }
 0x24e   : > { %652 = vmax.xlane.f32.xlu1 %v651_v54 }
 0x24f   : > { %v654_v55 = vsel %vm371_vm2, %v650_v52, -inf }
 0x250   : > { %655 = vmax.xlane.f32.xlu0 %v654_v55 }
 0x252   : > { %v788_v56 = vpop.f32.mrb[8].mxu0 }
 0x253   : > { %v795_v57 = vmul.f32 0.17677669, %v788_v56  ;;  %v1178_v58 = vpop.f32.mrb[9].mxu0 }
 0x254   : > { %v791_v59 = vpop.f32.mrb[10].mxu0 }
 0x255   : > { %v796_v60 = vmul.f32 0.17677669, %v791_v59  ;;  %v1179_v61 = vpop.f32.mrb[11].mxu0  ;;  %v797_v62 = vsel %vm371_vm2, %v795_v57, -inf }
 0x256   : > { %798 = vmax.xlane.f32.xlu1 %v797_v62 }
 0x257   : > { %v800_v63 = vsel %vm371_vm2, %v796_v60, -inf }
 0x258   : > { %801 = vmax.xlane.f32.xlu0 %v800_v63 }
 0x261   : > { %v374_v0 = vpop.xlane.xlu0 %373 }
 0x262   : > { %v378_v1 = vsub.f32 %v369_v33, %v374_v0 }
 0x263   : > { %v377_v2 = vpop.xlane.xlu1 %376 }
 0x264   : > { %v380_v3 = vmul.f32 1.442695, %v378_v1  ;;  %v379_v4 = vsub.f32 %v370_v36, %v377_v2 }
 0x266   : > { %1269 = vpow2.f32 %v380_v3  ;;  %v382_v6 = vmul.f32 1.442695, %v379_v4 }
 0x268   : > { %1271 = vpow2.f32 %v382_v6 }
 0x270   : > { %v1270_v7 = vpop.eup %1269 }
 0x271   : > { %v384_v8 = vsel %vm371_vm2, %v1270_v7, 0.0 }
 0x272   : > { %v1272_v9 = vpop.eup %1271  ;;  %385 = vadd.xlane.f32.xlu1 %v384_v8 }
 0x273   : > { %v387_v10 = vsel %vm371_vm2, %v1272_v9, 0.0 }
 0x274   : > { %388 = vadd.xlane.f32.xlu0 %v387_v10 }
 0x283   : > { %529 = vrot.lane.b32.xlu1 %v1487_v21, %s1369_s24 }
 0x2d3   : > { %v507_v11 = vpop.xlane.xlu0 %506 }
 0x2d4   : > { %v511_v12 = vsub.f32 %v503_v41, %v507_v11 }
 0x2d6   : > { %v513_v13 = vmul.f32 1.442695, %v511_v12 }
 0x2d7   : > { %v510_v14 = vpop.xlane.xlu0 %509 }
 0x2d8   : > { %1273 = vpow2.f32 %v513_v13  ;;  %v512_v15 = vsub.f32 %v504_v44, %v510_v14  ;;  %v1261_v13 = vld [vmem:[%s1633_s2] sm:$0xff]   ;;  %v1262_v14 = vld [vmem:[%s1633_s2 + $0x8] sm:$0xff]  }
 0x2d9   : > { %1187 = vmatpush3.bf16.msra.mxu0 %v1261_v13 }
 0x2da   : > { %v515_v16 = vmul.f32 1.442695, %v512_v15  ;;  %1188 = vmatprep.subr.bf16.mxu0 %v1366_v5  ;;  %v1263_v15 = vld [vmem:[%s1633_s2 + $0x10] sm:$0xff]  }
 0x2db   : > { %v653_v17 = vpop.xlane.xlu1 %652 }
 0x2dc   : > { %1275 = vpow2.f32 %v515_v16  ;;  %v657_v18 = vsub.f32 %v649_v49, %v653_v17  ;;  %v1264_v16 = vld [vmem:[%s1633_s2 + $0x18] sm:$0xff]   ;;  %v1265_v17 = vld [vmem:[%s1633_s2 + $0x20] sm:$0xff]  }
 0x2dd   : > { %v656_v19 = vpop.xlane.xlu0 %655  ;;  %1189 = vmatpush3.bf16.msra.mxu0 %v1262_v14 }
 0x2de   : > { %v659_v20 = vmul.f32 1.442695, %v657_v18  ;;  %v658_v22 = vsub.f32 %v650_v52, %v656_v19  ;;  %1190 = vmatprep.subr.bf16.mxu0 %v1366_v5 }
 0x2e0   : > { %1277 = vpow2.f32 %v659_v20  ;;  %v661_v23 = vmul.f32 1.442695, %v658_v22 }
 0x2e1   : > { %1191 = vmatpush3.bf16.msra.mxu0 %v1263_v15 }
 0x2e2   : > { %v1274_v24 = vpop.eup %1273  ;;  %1279 = vpow2.f32 %v661_v23  ;;  %1192 = vmatprep.subr.bf16.mxu0 %v1366_v5  ;;  %v1266_v23 = vld [vmem:[%s1633_s2 + $0x28] sm:$0xff]  }
 0x2e3   : > { %v799_v25 = vpop.xlane.xlu1 %798  ;;  %v517_v26 = vsel %vm371_vm2, %v1274_v24, 0.0 }
 0x2e4   : > { %v803_v27 = vsub.f32 %v795_v57, %v799_v25  ;;  %518 = vadd.xlane.f32.xlu1 %v517_v26 }
 0x2e5   : > { %v802_v28 = vpop.xlane.xlu0 %801  ;;  %1193 = vmatpush3.bf16.msra.mxu0 %v1264_v16 }
 0x2e6   : > { %v1276_v29 = vpop.eup %1275  ;;  %v805_v30 = vmul.f32 1.442695, %v803_v27  ;;  %v804_v31 = vsub.f32 %v796_v60, %v802_v28  ;;  %1194 = vmatprep.subr.bf16.mxu0 %v1366_v5  ;;  %v1268_v28 = vld [vmem:[%s1633_s2 + $0x38] sm:$0xff]  }
 0x2e7   : > { %v520_v32 = vsel %vm371_vm2, %v1276_v29, 0.0 }
 0x2e8   : > { %1281 = vpow2.f32 %v805_v30  ;;  %v807_v33 = vmul.f32 1.442695, %v804_v31  ;;  %521 = vadd.xlane.f32.xlu0 %v520_v32 }
 0x2e9   : > { %1195 = vmatpush3.bf16.msra.mxu0 %v1265_v17 }
 0x2ea   : > { %v1278_v34 = vpop.eup %1277  ;;  %1283 = vpow2.f32 %v807_v33  ;;  %1196 = vmatprep.subr.bf16.mxu0 %v1366_v5 }
 0x2eb   : > { %v663_v35 = vsel %vm371_vm2, %v1278_v34, 0.0 }
 0x2ec   : > { %v1280_v36 = vpop.eup %1279  ;;  %664 = vadd.xlane.f32.xlu1 %v663_v35 }
 0x2ed   : > { %v666_v37 = vsel %vm371_vm2, %v1280_v36, 0.0  ;;  %1197 = vmatpush3.bf16.msra.mxu0 %v1266_v23 }
 0x2ee   : > { %667 = vadd.xlane.f32.xlu0 %v666_v37  ;;  %1198 = vmatprep.subr.bf16.mxu0 %v1366_v5 }
 0x2f2   : > { %v1282_v38 = vpop.eup %1281 }
 0x2f3   : > { %v809_v39 = vsel %vm371_vm2, %v1282_v38, 0.0 }
 0x2f4   : > { %v1284_v40 = vpop.eup %1283  ;;  %810 = vadd.xlane.f32.xlu1 %v809_v39 }
 0x2f5   : > { %v812_v41 = vsel %vm371_vm2, %v1284_v40, 0.0 }
 0x2f6   : > { %813 = vadd.xlane.f32.xlu0 %v812_v41 }
 0x2ff   : > { %v386_v42 = vpop.xlane.xlu1 %385 }
 0x300   : > { %1285 = vrcp.f32 %v386_v42 }
 0x301   : > { %v389_v43 = vpop.xlane.xlu0 %388 }
 0x302   : > { %1287 = vrcp.f32 %v389_v43 }
 0x303   : > { %v530_v49 = vpop.permute.xlu1 %529 }
 0x305   : > { %821 = vrot.lane.b32.xlu1 %v1487_v21, %s1370_s25 }
 0x30a   : > { %v1286_v44 = vpop.eup %1285 }
 0x30b   : > { %v392_v46 = vmul.f32 %v1286_v44, %v1270_v7 }
 0x30c   : > { %v1288_v45 = vpop.eup %1287  ;;  %675 = vrot.lane.b32.xlu0 %v1487_v21, %s1368_s20 }
 0x30d   : > { %v393_v47 = vmul.f32 %v1288_v45, %v1272_v9 }
 0x30f   : > { %v394_v48 = vpack.c.bf16 %v393_v47, %v392_v46 }
 0x311   : > { %1147 = vmatmul.mubr.msk.bf16.vlgmr.msra.gmra.mrb[12].mxu1 %vm371_vm2, %v394_v48 }
 0x312   : > { %1157 = vmatpush3.bf16.msra.mxu1 %v530_v49  ;;  %1158 = vmatprep.mubr.msk.bf16.mxu1 %vm1367_vm1, %v1366_v5 }
 0x313   : > { %1168 = vmatprep.subr.bf16.mxu1 %v1366_v5 }
 0x371   : > { %v519_v50 = vpop.xlane.xlu1 %518 }
 0x372   : > { %1289 = vrcp.f32 %v519_v50 }
 0x375   : > { %v522_v51 = vpop.xlane.xlu0 %521 }
 0x376   : > { %1291 = vrcp.f32 %v522_v51 }
 0x379   : > { %v665_v52 = vpop.xlane.xlu1 %664 }
 0x37a   : > { %1293 = vrcp.f32 %v665_v52 }
 0x37b   : > { %v668_v53 = vpop.xlane.xlu0 %667 }
 0x37c   : > { %1295 = vrcp.f32 %v668_v53  ;;  %v1290_v21 = vpop.eup %1289 }
 0x37d   : > { %v525_v55 = vmul.f32 %v1290_v21, %v1274_v24  ;;  %v1267_v24 = vld [vmem:[%s1633_s2 + $0x30] sm:$0xff]  }
 0x37e   : > { %1199 = vmatpush3.bf16.msra.mxu0 %v1267_v24 }
 0x37f   : > { %1200 = vmatprep.subr.bf16.mxu0 %v1366_v5 }
 0x380   : > { %v1292_v54 = vpop.eup %1291 }
 0x381   : > { %v526_v56 = vmul.f32 %v1292_v54, %v1276_v29  ;;  %v811_v57 = vpop.xlane.xlu1 %810 }
 0x382   : > { %1297 = vrcp.f32 %v811_v57  ;;  %1201 = vmatpush3.bf16.msra.mxu0 %v1268_v28 }
 0x383   : > { %v814_v58 = vpop.xlane.xlu0 %813  ;;  %v527_v59 = vpack.c.bf16 %v526_v56, %v525_v55 }
 0x384   : > { %1299 = vrcp.f32 %v814_v58  ;;  %v1294_v60 = vpop.eup %1293 }
 0x385   : > { %1159 = vmatmul.mubr.msk.bf16.vlgmr.msra.gmra.mrb[16].mxu1 %vm371_vm2, %v527_v59  ;;  %v671_v0 = vmul.f32 %v1294_v60, %v1278_v34  ;;  %v822_v3 = vpop.permute.xlu1 %821 }
 0x386   : > { %v1296_v61 = vpop.eup %1295  ;;  %1170 = vmatprep.mubr.msk.bf16.mxu1 %vm1367_vm1, %v1366_v5 }
 0x387   : > { %v672_v62 = vmul.f32 %v1296_v61, %v1280_v36  ;;  %v676_v63 = vpop.permute.xlu0 %675 }
 0x388   : > { %1169 = vmatpush3.bf16.msra.mxu1 %v676_v63 }
 0x389   : > { %1180 = vmatprep.subr.bf16.mxu1 %v1366_v5  ;;  %v673_v1 = vpack.c.bf16 %v672_v62, %v671_v0 }
 0x38c   : > { %v1298_v2 = vpop.eup %1297 }
 0x38d   : > { %1171 = vmatmul.mubr.msk.bf16.vlgmr.msra.gmra.mrb[20].mxu1 %vm371_vm2, %v673_v1  ;;  %v817_v7 = vmul.f32 %v1298_v2, %v1282_v38 }
 0x38e   : > { %v1300_v4 = vpop.eup %1299  ;;  %1181 = vmatpush3.bf16.msra.mxu1 %v822_v3  ;;  %1182 = vmatprep.mubr.msk.bf16.mxu1 %vm1367_vm1, %v1366_v5 }
 0x38f   : > { %v818_v6 = vmul.f32 %v1300_v4, %v1284_v40 }
 0x391   : > { %v819_v8 = vpack.c.bf16 %v818_v6, %v817_v7 }
 0x395   : > { %1183 = vmatmul.mubr.msk.bf16.vlgmr.msra.gmra.mrb[24].mxu1 %vm371_vm2, %v819_v8 }
 0x3e4   : > { %v432_v9 = vpop.f32.mrb[12].mxu1 }
 0x3e5   : > { %439 = vst.msk [vmem:[#allocation3] sm:$0xff] %vm216_vm0, %v432_v9  ;;  %v1148_v10 = vpop.f32.mrb[13].mxu1 }
 0x3e6   : > { %v435_v11 = vpop.f32.mrb[14].mxu1 }
 0x3e7   : > { %440 = vst.msk [vmem:[#allocation3 + $0x8] sm:$0xff] %vm216_vm0, %v435_v11  ;;  %v1149_v12 = vpop.f32.mrb[15].mxu1 }
 0x458   : > { %v569_v18 = vpop.f32.mrb[16].mxu1 }
 0x459   : > { %578 = vrot.lane.b32.xlu1 %v569_v18, %s1370_s25  ;;  %v1160_v19 = vpop.f32.mrb[17].mxu1 }
 0x45a   : > { %v572_v20 = vpop.f32.mrb[18].mxu1 }
 0x45b   : > { %580 = vrot.lane.b32.xlu0 %v572_v20, %s1370_s25  ;;  %v1161_v22 = vpop.f32.mrb[19].mxu1 }
 0x460   : > { %v715_v25 = vpop.f32.mrb[20].mxu1 }
 0x461   : > { %724 = vrot.lane.b32.xlu1 %v715_v25, %s1368_s20  ;;  %v1172_v26 = vpop.f32.mrb[21].mxu1 }
 0x462   : > { %v718_v27 = vpop.f32.mrb[22].mxu1 }
 0x463   : > { %726 = vrot.lane.b32.xlu0 %v718_v27, %s1368_s20  ;;  %v1173_v29 = vpop.f32.mrb[23].mxu1  ;;  %s162_s20 = sand.u32 1, %s1355_s13  }
 0x464   : > { %s1590_s5 = scalar_lea.sflag [#allocation5], %s162_s20 }
 0x468   : > { %v861_v30 = vpop.f32.mrb[24].mxu1 }
 0x469   : > { %870 = vrot.lane.b32.xlu1 %v861_v30, %s1369_s24  ;;  %v1184_v31 = vpop.f32.mrb[25].mxu1 }
 0x46a   : > { %v864_v32 = vpop.f32.mrb[26].mxu1 }
 0x46b   : > { %872 = vrot.lane.b32.xlu0 %v864_v32, %s1369_s24  ;;  %v1185_v33 = vpop.f32.mrb[27].mxu1  ;;  %s1069_s24 = sshll.u32 %s162_s20, 4 }
 0x46c   : > { %s164_s26 = scalar_lea.vmem [#allocation4], %s1069_s24 }
 0x46d   : > { %s1003_s27 = sshll.u32 %s164_s26, 4  ;;  %s1581_s27 = int_to_ptr.vmem [resolvable:$true] %s1003_s27 }
 0x46e   : > { %s1301_s16 = scalar_lea.vmem %s1581_s27, 256  ;;  %p1308_p0 = scmp.lt.s32.totalorder %s1581_s27, %s1306_s7 }
 0x46f   : > { %p1302_p11 = scmp.ne.s32.totalorder %s1581_s27, %s1301_s16  ;;  %p1309_p1 = scmp.lt.s32.totalorder %s1307_s8, %s1301_s16 }
 0x471   : > { %p1303_p12 = pnand %p1302_p11, %p1432_p5  ;;  %p1310_p2 = por %p1309_p1, %p1308_p0 }
 0x473   : > { %p1304_p13 = pneg %p1303_p12 }
 0x475   : > { %p1311_p3 = pnand %p1310_p2, %p1304_p13 }
 0x4cb   : > { %v579_v34 = vpop.permute.xlu1 %578 }
 0x4cc   : > { %585 = vst.msk [vmem:[#allocation3] sm:$0xff] %vm584_vm3, %v579_v34 }
 0x4cd   : > { %v581_v35 = vpop.permute.xlu0 %580 }
 0x4ce   : > { %586 = vst.msk [vmem:[#allocation3 + $0x8] sm:$0xff] %vm584_vm3, %v581_v35 }
 0x4d3   : > { %v725_v36 = vpop.permute.xlu1 %724 }
 0x4d4   : > { %731 = vst.msk [vmem:[#allocation3] sm:$0xff] %vm730_vm4, %v725_v36 }
 0x4d5   : > { %v727_v5 = vpop.permute.xlu0 %726 }
 0x4d6   : > { %732 = vst.msk [vmem:[#allocation3 + $0x8] sm:$0xff] %vm730_vm4, %v727_v5 }
 0x4db   : > { %v871_v37 = vpop.permute.xlu1 %870 }
 0x4dc   : > { %877 = vst.msk [vmem:[#allocation3] sm:$0xff] %vm876_vm5, %v871_v37 }
 0x4dd   : > { %v873_v38 = vpop.permute.xlu0 %872 }
 0x4de   : > { %878 = vst.msk [vmem:[#allocation3 + $0x8] sm:$0xff] %vm876_vm5, %v873_v38 }
 0x4e3   : > { %v879_v39 = vld [vmem:[#allocation3] sm:$0xff] }
 0x4e5   : > { %v880_v40 = vld [vmem:[#allocation3 + $0x8] sm:$0xff] }
 0x4e6   : > { %v881_v41 = vpack.c.bf16 %v880_v40, %v879_v39 }
 0x4e8   : > { %1203 = vmatmul.mubr.bf16.vlgmr.msra.gmra.mrb[12].mxu0 %v881_v41 }
 0x5bb   : > { %v980_v42 = vpop.f32.mrb[12].mxu0 }
 0x5bc   : > { %987 = vst.msk [vmem:[%s164_s26] sm:$0xff] %vm216_vm0, %v980_v42  ;;  %v1204_v43 = vpop.f32.mrb[13].mxu0 }
 0x5bd   : > { %v983_v44 = vpop.f32.mrb[14].mxu0 }
 0x5be   : > { %988 = vst.msk [vmem:[%s164_s26 + $0x8] sm:$0xff] %vm216_vm0, %v983_v44  ;;  %v1205_v45 = vpop.f32.mrb[15].mxu0 }
 0x5bf   : > { %1314 = shalt.err (!%p1311_p3)
}
 0x5c0   : > { %s1315_s9 = scalar_lea.hbm %s1587_s4, 256  ;;  %s1319_s17 = scalar_lea.hbm %s1634_s3, 512 }
 0x5c1   : > { %p1316_p4 = scmp.ne.s32.totalorder %s1587_s4, %s1315_s9  ;;  %p1320_p9 = scmp.lt.u32.totalorder %s1587_s4, %s1634_s3 }
 0x5c2   : > { %p1321_p10 = scmp.lt.u32.totalorder %s1319_s17, %s1315_s9  ;;  %p1323_p12 = scmp.lt.u32.totalorder %s1315_s9, %s1587_s4 }
 0x5c3   : > { %p1317_p7 = pnand %p1316_p4, %p1432_p5 }
 0x5c4   : > { %p1322_p11 = por %p1321_p10, %p1320_p9 }
 0x5c5   : > { %p1318_p8 = pneg %p1317_p7 }
 0x5c6   : > { %p1324_p13 = por %p1323_p12, %p1322_p11 }
 0x5c8   : > { %p1325_p0 = pnand %p1324_p13, %p1318_p8 }
 0x5ca   : > { %1328 = shalt.err (!%p1325_p0)
}
 0x5cb   : > { %s1372_s20 = smov 128   ;;  %s1373_s24 = smov 8  }
 0x5cc   : > { %1206 = dma.vmem_to_hbm [thread:$0]  (%p1432_p5), %s1581_s27, 256, %s1587_s4, %s1590_s5, %s1372_s20, %s1372_s20, %s1373_s24  }
 0x5cd PF: > { %p1212_p1 = scmp.ge.s32.totalorder %s1363_s15, 2  ;;  %s1018_s26 = sand.u32 1, %s1351_s12  }
 0x5ce   : > { %s1019_s28 = scalar_lea.sflag [#allocation5], %s1018_s26 }
 0x5cf   : > { %p1209_p2 = pnand %p1212_p1, %p1436_p6 }
 0x5d1   : > { %1346 = dma.done.wait (!%p1209_p2), %s1019_s28, 256  }
 0x5d2   : > { %1348 = vsyncadd (!%p1209_p2), %s1019_s28, 4294967040  ;;  %p13_p3 = scmp.ge.s32.totalorder %s1419_s18, 4   ;;  %s1637_s12 = smov %s1355_s13 }
 0x5d3   : > { %s1638_s13 = smov %s1359_s14  ;;  %s1639_s14 = smov %s1430_s21 }
 0x5d4   : > { %s1640_s15 = smov %s1419_s18  ;;  %15 = sbr.rel (!%p13_p3) target bundleno = 3 (0x3), region = 68 }
 0x5db   :  { %1024 = vsyncpa [#allocation5], 1 }
 0x5dc   :  { %1026 = vsyncpa [#allocation5 + $0x1], 1 }

</bundles_post_ra>
